<compile_context>
chip_gen: v7x
topology: tpu7x:2x2x1
jax: 0.10.0
libtpu: 0.0.40
codegen_flags: <defaults>
</compile_context>

<pallas_src>
import functools

import jax
import jax.numpy as jnp
from jax.experimental import pallas as pl
from jax.experimental.pallas import tpu as pltpu


def _gl2_kernel(u_ref, psi_ref, out_ref, *, epsilon, sample_w):
    """One grid step: Bt samples packed along lanes, block = (1, 2, H, Bt*W)."""
    u = u_ref[...]
    psi = psi_ref[...]

    u_x = u[0, 0]          # (H, L) with L = Bt * W
    u_y = u[0, 1]
    psi_r = psi[0, 0]
    psi_i = psi[0, 1]

    h, l = u_x.shape

    # Edge masks: computed ONCE per block, shared by all 8 gradient calls.
    row = jax.lax.broadcasted_iota(jnp.int32, (h, l), 0)
    col = jax.lax.broadcasted_iota(jnp.int32, (h, l), 1) % sample_w
    row_first = row == 0
    row_last = row == h - 1
    col_first = col == 0
    col_last = col == sample_w - 1

    def grad(f, axis, first_mask, last_mask):
        # torch.gradient(f, dim=axis)[0], unit spacing: central difference in
        # the interior, one-sided first-order at the (per-sample) edges.
        # Rolls wrap around the packed lane axis, but wrapped values only
        # appear at positions the edge masks overwrite, so samples never mix.
        n = f.shape[axis]
        f_plus = pltpu.roll(f, shift=n - 1, axis=axis)   # f[i+1] (wrapped)
        f_minus = pltpu.roll(f, shift=1, axis=axis)      # f[i-1] (wrapped)
        g = jnp.where(first_mask, f_plus - f, (f_plus - f_minus) * 0.5)
        g = jnp.where(last_mask, f - f_minus, g)
        return g

    def laplacian(f):
        # Nested first-order gradients (not a fused stencil) to match PyTorch.
        d00 = grad(grad(f, 0, row_first, row_last), 0, row_first, row_last)
        d11 = grad(grad(f, 1, col_first, col_last), 1, col_first, col_last)
        return d00 + d11

    # Sequenced so lap(u_x) intermediates die before lap(u_y) starts.
    lap_u = laplacian(u_x)
    lap_u = lap_u + laplacian(u_y)

    # No sqrt round-trips: squared magnitudes used directly.
    psi_mag_sq = psi_r * psi_r + psi_i * psi_i
    coeff = (1.0 / (epsilon * epsilon)) * (1.0 - psi_mag_sq)
    re = lap_u + coeff * psi_r
    im = coeff * psi_i
    sq = re * re + im * im                       # |gl2_term|^2

    # Raw (unnormalized) partial sum for this chunk; the /(H*W) and /B are
    # folded into a single multiply in the wrapper.
    s = jnp.sum(sq, axis=1, keepdims=True)       # (H, 1)
    s = jnp.sum(s, axis=0, keepdims=True)        # (1, 1)
    out_ref[...] = jnp.broadcast_to(s.reshape(1, 1, 1), out_ref.shape)


def gl2_loss(u, psi, epsilon=1.0):
    assert u.shape == psi.shape
    b, c, h, w = u.shape
    assert c == 2, "expected 2 channels (components / real+imag)"
    assert h >= 2 and w >= 2, "torch.gradient needs >=2 points per diff'd dim"

    u = u.astype(jnp.float32)
    psi = psi.astype(jnp.float32)

    # Samples per block: largest divisor of B whose per-input block stays
    # under a conservative VMEM budget (2 inputs x 2 pipeline buffers plus
    # ~10 live HxL f32 temporaries must fit v7x's smaller VMEM).
    block_budget = 2 * 1024 * 1024
    per_sample = 2 * h * w * 4
    bt = 1
    for cand in range(1, b + 1):
        if b % cand == 0 and cand * per_sample <= block_budget:
            bt = cand
    n_chunks = b // bt
    lane = bt * w

    def pack(x):
        # (B, 2, H, W) -> (n_chunks, 2, H, Bt*W): lane index = j*W + w
        x = x.reshape(n_chunks, bt, 2, h, w)
        x = jnp.transpose(x, (0, 2, 3, 1, 4))
        return x.reshape(n_chunks, 2, h, lane)

    u_p = pack(u)
    psi_p = pack(psi)

    kernel = functools.partial(_gl2_kernel, epsilon=float(epsilon), sample_w=w)
    partials = pl.pallas_call(
        kernel,
        out_shape=jax.ShapeDtypeStruct((n_chunks, 8, 128), jnp.float32),
        grid_spec=pltpu.PrefetchScalarGridSpec(
            num_scalar_prefetch=0,
            grid=(n_chunks,),
            in_specs=[
                pl.BlockSpec((1, 2, h, lane), lambda i: (i, 0, 0, 0)),
                pl.BlockSpec((1, 2, h, lane), lambda i: (i, 0, 0, 0)),
            ],
            out_specs=pl.BlockSpec((1, 8, 128), lambda i: (i, 0, 0)),
        ),
        compiler_params=pltpu.CompilerParams(
            dimension_semantics=("parallel",),      # chunks independent -> v7x 2-TC
            vmem_limit_bytes=32 * 1024 * 1024,
        ),
    )(u_p, psi_p)

    # Sum per-chunk partials; single combined scale = 1/(H*W) per-sample mean
    # and 1/B batch mean.
    return jnp.sum(partials[:, 0, 0]) * (1.0 / float(h * w * b))


# ----------------------------------------------------------------------------
# Pure-JAX reference (mirrors the PyTorch module) for a correctness check.
# ----------------------------------------------------------------------------
def _grad_ref(f, axis):
    f = jnp.moveaxis(f, axis, 0)
    first = (f[1] - f[0])[None]
    last = (f[-1] - f[-2])[None]
    central = (f[2:] - f[:-2]) * 0.5
    g = jnp.concatenate([first, central, last], axis=0)
    return jnp.moveaxis(g, 0, axis)


def gl2_loss_ref(u, psi, epsilon=1.0):
    b = u.shape[0]
    total = 0.0
    for i in range(b):
        u_x, u_y = u[i, 0], u[i, 1]
        psi_r, psi_i = psi[i, 0], psi[i, 1]
        lap_ux = (_grad_ref(_grad_ref(u_x, 0), 0) + _grad_ref(_grad_ref(u_x, 1), 1))
        lap_uy = (_grad_ref(_grad_ref(u_y, 0), 0) + _grad_ref(_grad_ref(u_y, 1), 1))
        lap_u = lap_ux + lap_uy
        mag2 = psi_r * psi_r + psi_i * psi_i
        coeff = (1.0 / epsilon ** 2) * (1.0 - mag2)
        re = lap_u + coeff * psi_r
        im = coeff * psi_i
        total = total + jnp.mean(re * re + im * im)
    return total / b


if __name__ == "__main__":
    key = jax.random.PRNGKey(0)
    k_u, k_psi = jax.random.split(key)

    B, C, H, W = 2, 2, 16, 16
    u = jax.random.normal(k_u, (B, C, H, W), dtype=jnp.float32)
    psi = jax.random.normal(k_psi, (B, C, H, W), dtype=jnp.float32)

    loss = gl2_loss(u, psi, epsilon=1.0)
    jax.block_until_ready(loss)

    ref = gl2_loss_ref(u, psi, epsilon=1.0)
    jax.block_until_ready(ref)
    assert jnp.allclose(loss, ref, rtol=1e-4, atol=1e-5), (loss, ref)

    print("KERNEL_OK")
</pallas_src>

<mosaic_0001>
module attributes {stable_mosaic.version = 11 : i64} {
  func.func @_gl2_kernel(%arg0: i32, %arg1: memref<1x2x16x32xf32, #tpu.memory_space<vmem>>, %arg2: memref<1x2x16x32xf32, #tpu.memory_space<vmem>>, %arg3: memref<1x8x128xf32, #tpu.memory_space<vmem>>) attributes {dimension_semantics = [#tpu.dimension_semantics<parallel>], iteration_bounds = array<i64: 1>, scalar_prefetch = 0 : i64, scratch_operands = 0 : i64, tpu.core_type = #tpu.core_type<tc>, window_params = [{transform_indices = @transform_0, window_bounds = array<i64: 1, 2, 16, 32>}, {transform_indices = @transform_1, window_bounds = array<i64: 1, 2, 16, 32>}, {transform_indices = @transform_2, window_bounds = array<i64: 1, 8, 128>}]} {
    %c0 = arith.constant 0 : index
    %c0_0 = arith.constant 0 : index
    %c0_1 = arith.constant 0 : index
    %c0_2 = arith.constant 0 : index
    %0 = vector.load %arg1[%c0, %c0_0, %c0_1, %c0_2] : memref<1x2x16x32xf32, #tpu.memory_space<vmem>>, vector<1x2x16x32xf32>
    %c0_3 = arith.constant 0 : index
    %c0_4 = arith.constant 0 : index
    %c0_5 = arith.constant 0 : index
    %c0_6 = arith.constant 0 : index
    %1 = vector.load %arg2[%c0_3, %c0_4, %c0_5, %c0_6] : memref<1x2x16x32xf32, #tpu.memory_space<vmem>>, vector<1x2x16x32xf32>
    %2 = vector.extract_strided_slice %0 {offsets = [0, 0, 0, 0], sizes = [1, 1, 16, 32], strides = [1, 1, 1, 1]} : vector<1x2x16x32xf32> to vector<1x1x16x32xf32>
    %3 = vector.shape_cast %2 : vector<1x1x16x32xf32> to vector<16x32xf32>
    %4 = vector.extract_strided_slice %0 {offsets = [0, 1, 0, 0], sizes = [1, 1, 16, 32], strides = [1, 1, 1, 1]} : vector<1x2x16x32xf32> to vector<1x1x16x32xf32>
    %5 = vector.shape_cast %4 : vector<1x1x16x32xf32> to vector<16x32xf32>
    %6 = vector.extract_strided_slice %1 {offsets = [0, 0, 0, 0], sizes = [1, 1, 16, 32], strides = [1, 1, 1, 1]} : vector<1x2x16x32xf32> to vector<1x1x16x32xf32>
    %7 = vector.shape_cast %6 : vector<1x1x16x32xf32> to vector<16x32xf32>
    %8 = vector.extract_strided_slice %1 {offsets = [0, 1, 0, 0], sizes = [1, 1, 16, 32], strides = [1, 1, 1, 1]} : vector<1x2x16x32xf32> to vector<1x1x16x32xf32>
    %9 = vector.shape_cast %8 : vector<1x1x16x32xf32> to vector<16x32xf32>
    %10 = tpu.iota {dimensions = array<i32: 0>} : vector<16x32xi32>
    %11 = tpu.iota {dimensions = array<i32: 1>} : vector<16x32xi32>
    %c16_i32 = arith.constant 16 : i32
    %c0_i32 = arith.constant 0 : i32
    %12 = arith.cmpi eq, %c16_i32, %c0_i32 : i32
    %c1_i32 = arith.constant 1 : i32
    %13 = arith.select %12, %c1_i32, %c16_i32 : i32
    %14 = vector.broadcast %13 : i32 to vector<16x32xi32>
    %15 = arith.remsi %11, %14 : vector<16x32xi32>
    %c0_i32_7 = arith.constant 0 : i32
    %16 = vector.broadcast %c0_i32_7 : i32 to vector<16x32xi32>
    %17 = arith.cmpi ne, %15, %16 : vector<16x32xi32>
    %c0_i32_8 = arith.constant 0 : i32
    %18 = vector.broadcast %c0_i32_8 : i32 to vector<16x32xi32>
    %19 = arith.cmpi slt, %15, %18 : vector<16x32xi32>
    %c0_i32_9 = arith.constant 0 : i32
    %20 = arith.cmpi slt, %13, %c0_i32_9 : i32
    %21 = vector.broadcast %20 : i1 to vector<16x32xi1>
    %22 = vector.broadcast %21 : vector<16x32xi1> to vector<16x32xi1>
    %23 = arith.xori %19, %22 : vector<16x32xi1>
    %24 = arith.andi %23, %17 : vector<16x32xi1>
    %25 = vector.broadcast %13 : i32 to vector<16x32xi32>
    %26 = arith.addi %15, %25 : vector<16x32xi32>
    %27 = arith.select %24, %26, %15 : vector<16x32xi1>, vector<16x32xi32>
    %c0_i32_10 = arith.constant 0 : i32
    %28 = vector.broadcast %c0_i32_10 : i32 to vector<16x32xi32>
    %29 = arith.cmpi eq, %10, %28 : vector<16x32xi32>
    %c15_i32 = arith.constant 15 : i32
    %30 = vector.broadcast %c15_i32 : i32 to vector<16x32xi32>
    %31 = arith.cmpi eq, %10, %30 : vector<16x32xi32>
    %c0_i32_11 = arith.constant 0 : i32
    %32 = vector.broadcast %c0_i32_11 : i32 to vector<16x32xi32>
    %33 = arith.cmpi eq, %27, %32 : vector<16x32xi32>
    %c15_i32_12 = arith.constant 15 : i32
    %34 = vector.broadcast %c15_i32_12 : i32 to vector<16x32xi32>
    %35 = arith.cmpi eq, %27, %34 : vector<16x32xi32>
    %c15_i32_13 = arith.constant 15 : i32
    %36 = tpu.dynamic_rotate %3 by %c15_i32_13 dim 0 : vector<16x32xf32>, i32 -> vector<16x32xf32>
    %c1_i32_14 = arith.constant 1 : i32
    %37 = tpu.dynamic_rotate %3 by %c1_i32_14 dim 0 : vector<16x32xf32>, i32 -> vector<16x32xf32>
    %38 = arith.subf %36, %3 : vector<16x32xf32>
    %39 = arith.subf %36, %37 : vector<16x32xf32>
    %cst = arith.constant 5.000000e-01 : f32
    %40 = vector.broadcast %cst : f32 to vector<16x32xf32>
    %41 = arith.mulf %39, %40 : vector<16x32xf32>
    %42 = arith.select %29, %38, %41 : vector<16x32xi1>, vector<16x32xf32>
    %43 = arith.subf %3, %37 : vector<16x32xf32>
    %44 = arith.select %31, %43, %42 : vector<16x32xi1>, vector<16x32xf32>
    %c15_i32_15 = arith.constant 15 : i32
    %45 = tpu.dynamic_rotate %44 by %c15_i32_15 dim 0 : vector<16x32xf32>, i32 -> vector<16x32xf32>
    %c1_i32_16 = arith.constant 1 : i32
    %46 = tpu.dynamic_rotate %44 by %c1_i32_16 dim 0 : vector<16x32xf32>, i32 -> vector<16x32xf32>
    %47 = arith.subf %45, %44 : vector<16x32xf32>
    %48 = arith.subf %45, %46 : vector<16x32xf32>
    %cst_17 = arith.constant 5.000000e-01 : f32
    %49 = vector.broadcast %cst_17 : f32 to vector<16x32xf32>
    %50 = arith.mulf %48, %49 : vector<16x32xf32>
    %51 = arith.select %29, %47, %50 : vector<16x32xi1>, vector<16x32xf32>
    %52 = arith.subf %44, %46 : vector<16x32xf32>
    %53 = arith.select %31, %52, %51 : vector<16x32xi1>, vector<16x32xf32>
    %c31_i32 = arith.constant 31 : i32
    %54 = tpu.dynamic_rotate %3 by %c31_i32 dim 1 : vector<16x32xf32>, i32 -> vector<16x32xf32>
    %c1_i32_18 = arith.constant 1 : i32
    %55 = tpu.dynamic_rotate %3 by %c1_i32_18 dim 1 : vector<16x32xf32>, i32 -> vector<16x32xf32>
    %56 = arith.subf %54, %3 : vector<16x32xf32>
    %57 = arith.subf %54, %55 : vector<16x32xf32>
    %cst_19 = arith.constant 5.000000e-01 : f32
    %58 = vector.broadcast %cst_19 : f32 to vector<16x32xf32>
    %59 = arith.mulf %57, %58 : vector<16x32xf32>
    %60 = arith.select %33, %56, %59 : vector<16x32xi1>, vector<16x32xf32>
    %61 = arith.subf %3, %55 : vector<16x32xf32>
    %62 = arith.select %35, %61, %60 : vector<16x32xi1>, vector<16x32xf32>
    %c31_i32_20 = arith.constant 31 : i32
    %63 = tpu.dynamic_rotate %62 by %c31_i32_20 dim 1 : vector<16x32xf32>, i32 -> vector<16x32xf32>
    %c1_i32_21 = arith.constant 1 : i32
    %64 = tpu.dynamic_rotate %62 by %c1_i32_21 dim 1 : vector<16x32xf32>, i32 -> vector<16x32xf32>
    %65 = arith.subf %63, %62 : vector<16x32xf32>
    %66 = arith.subf %63, %64 : vector<16x32xf32>
    %cst_22 = arith.constant 5.000000e-01 : f32
    %67 = vector.broadcast %cst_22 : f32 to vector<16x32xf32>
    %68 = arith.mulf %66, %67 : vector<16x32xf32>
    %69 = arith.select %33, %65, %68 : vector<16x32xi1>, vector<16x32xf32>
    %70 = arith.subf %62, %64 : vector<16x32xf32>
    %71 = arith.select %35, %70, %69 : vector<16x32xi1>, vector<16x32xf32>
    %72 = arith.addf %53, %71 : vector<16x32xf32>
    %c15_i32_23 = arith.constant 15 : i32
    %73 = tpu.dynamic_rotate %5 by %c15_i32_23 dim 0 : vector<16x32xf32>, i32 -> vector<16x32xf32>
    %c1_i32_24 = arith.constant 1 : i32
    %74 = tpu.dynamic_rotate %5 by %c1_i32_24 dim 0 : vector<16x32xf32>, i32 -> vector<16x32xf32>
    %75 = arith.subf %73, %5 : vector<16x32xf32>
    %76 = arith.subf %73, %74 : vector<16x32xf32>
    %cst_25 = arith.constant 5.000000e-01 : f32
    %77 = vector.broadcast %cst_25 : f32 to vector<16x32xf32>
    %78 = arith.mulf %76, %77 : vector<16x32xf32>
    %79 = arith.select %29, %75, %78 : vector<16x32xi1>, vector<16x32xf32>
    %80 = arith.subf %5, %74 : vector<16x32xf32>
    %81 = arith.select %31, %80, %79 : vector<16x32xi1>, vector<16x32xf32>
    %c15_i32_26 = arith.constant 15 : i32
    %82 = tpu.dynamic_rotate %81 by %c15_i32_26 dim 0 : vector<16x32xf32>, i32 -> vector<16x32xf32>
    %c1_i32_27 = arith.constant 1 : i32
    %83 = tpu.dynamic_rotate %81 by %c1_i32_27 dim 0 : vector<16x32xf32>, i32 -> vector<16x32xf32>
    %84 = arith.subf %82, %81 : vector<16x32xf32>
    %85 = arith.subf %82, %83 : vector<16x32xf32>
    %cst_28 = arith.constant 5.000000e-01 : f32
    %86 = vector.broadcast %cst_28 : f32 to vector<16x32xf32>
    %87 = arith.mulf %85, %86 : vector<16x32xf32>
    %88 = arith.select %29, %84, %87 : vector<16x32xi1>, vector<16x32xf32>
    %89 = arith.subf %81, %83 : vector<16x32xf32>
    %90 = arith.select %31, %89, %88 : vector<16x32xi1>, vector<16x32xf32>
    %c31_i32_29 = arith.constant 31 : i32
    %91 = tpu.dynamic_rotate %5 by %c31_i32_29 dim 1 : vector<16x32xf32>, i32 -> vector<16x32xf32>
    %c1_i32_30 = arith.constant 1 : i32
    %92 = tpu.dynamic_rotate %5 by %c1_i32_30 dim 1 : vector<16x32xf32>, i32 -> vector<16x32xf32>
    %93 = arith.subf %91, %5 : vector<16x32xf32>
    %94 = arith.subf %91, %92 : vector<16x32xf32>
    %cst_31 = arith.constant 5.000000e-01 : f32
    %95 = vector.broadcast %cst_31 : f32 to vector<16x32xf32>
    %96 = arith.mulf %94, %95 : vector<16x32xf32>
    %97 = arith.select %33, %93, %96 : vector<16x32xi1>, vector<16x32xf32>
    %98 = arith.subf %5, %92 : vector<16x32xf32>
    %99 = arith.select %35, %98, %97 : vector<16x32xi1>, vector<16x32xf32>
    %c31_i32_32 = arith.constant 31 : i32
    %100 = tpu.dynamic_rotate %99 by %c31_i32_32 dim 1 : vector<16x32xf32>, i32 -> vector<16x32xf32>
    %c1_i32_33 = arith.constant 1 : i32
    %101 = tpu.dynamic_rotate %99 by %c1_i32_33 dim 1 : vector<16x32xf32>, i32 -> vector<16x32xf32>
    %102 = arith.subf %100, %99 : vector<16x32xf32>
    %103 = arith.subf %100, %101 : vector<16x32xf32>
    %cst_34 = arith.constant 5.000000e-01 : f32
    %104 = vector.broadcast %cst_34 : f32 to vector<16x32xf32>
    %105 = arith.mulf %103, %104 : vector<16x32xf32>
    %106 = arith.select %33, %102, %105 : vector<16x32xi1>, vector<16x32xf32>
    %107 = arith.subf %99, %101 : vector<16x32xf32>
    %108 = arith.select %35, %107, %106 : vector<16x32xi1>, vector<16x32xf32>
    %109 = arith.addf %90, %108 : vector<16x32xf32>
    %110 = arith.addf %72, %109 : vector<16x32xf32>
    %111 = arith.mulf %7, %7 : vector<16x32xf32>
    %112 = arith.mulf %9, %9 : vector<16x32xf32>
    %113 = arith.addf %111, %112 : vector<16x32xf32>
    %cst_35 = arith.constant 1.000000e+00 : f32
    %114 = vector.broadcast %cst_35 : f32 to vector<16x32xf32>
    %115 = arith.subf %114, %113 : vector<16x32xf32>
    %cst_36 = arith.constant 1.000000e+00 : f32
    %116 = vector.broadcast %cst_36 : f32 to vector<16x32xf32>
    %117 = arith.mulf %116, %115 : vector<16x32xf32>
    %118 = arith.mulf %117, %7 : vector<16x32xf32>
    %119 = arith.addf %110, %118 : vector<16x32xf32>
    %120 = arith.mulf %117, %9 : vector<16x32xf32>
    %121 = arith.mulf %119, %119 : vector<16x32xf32>
    %122 = arith.mulf %120, %120 : vector<16x32xf32>
    %123 = arith.addf %121, %122 : vector<16x32xf32>
    %cst_37 = arith.constant dense<0.000000e+00> : vector<16xf32>
    %124 = vector.multi_reduction <add>, %123, %cst_37 [1] : vector<16x32xf32> to vector<16xf32>
    %125 = vector.shape_cast %124 : vector<16xf32> to vector<16x1xf32>
    %cst_38 = arith.constant dense<0.000000e+00> : vector<1xf32>
    %126 = vector.multi_reduction <add>, %125, %cst_38 [0] : vector<16x1xf32> to vector<1xf32>
    %127 = vector.shape_cast %126 : vector<1xf32> to vector<1x1xf32>
    %128 = vector.shape_cast %127 : vector<1x1xf32> to vector<1x1x1xf32>
    %129 = vector.shape_cast %128 : vector<1x1x1xf32> to vector<1x1x1xf32>
    %130 = vector.broadcast %129 : vector<1x1x1xf32> to vector<1x8x128xf32>
    %c0_39 = arith.constant 0 : index
    %c0_40 = arith.constant 0 : index
    %c0_41 = arith.constant 0 : index
    %131 = vector.load %arg3[%c0_39, %c0_40, %c0_41] : memref<1x8x128xf32, #tpu.memory_space<vmem>>, vector<1x8x128xf32>
    tpu.vector_store %arg3[%c0_39, %c0_40, %c0_41], %130 {strides = array<i32>} : memref<1x8x128xf32, #tpu.memory_space<vmem>>, vector<1x8x128xf32>,
    return
  }
  func.func @transform_0(%arg0: i32) -> (i32, i32, i32, i32) {
    %c0_i32 = arith.constant 0 : i32
    %c0_i32_0 = arith.constant 0 : i32
    %c0_i32_1 = arith.constant 0 : i32
    %c0_i32_2 = arith.constant 0 : i32
    return %arg0, %c0_i32, %c0_i32_0, %c0_i32_1 : i32, i32, i32, i32
  }
  func.func @transform_1(%arg0: i32) -> (i32, i32, i32, i32) {
    %c0_i32 = arith.constant 0 : i32
    %c0_i32_0 = arith.constant 0 : i32
    %c0_i32_1 = arith.constant 0 : i32
    %c0_i32_2 = arith.constant 0 : i32
    return %arg0, %c0_i32, %c0_i32_0, %c0_i32_1 : i32, i32, i32, i32
  }
  func.func @transform_2(%arg0: i32) -> (i32, i32, i32) {
    %c0_i32 = arith.constant 0 : i32
    %c0_i32_0 = arith.constant 0 : i32
    %c0_i32_1 = arith.constant 0 : i32
    return %arg0, %c0_i32, %c0_i32_0 : i32, i32, i32
  }
}

</mosaic_0001>

<bundles_post_ra>
// kernel: tpu_custom_call.1
= control target key start
LH: loop header
LB: loop body
LE: loop exit
PB: predicated region body
PF: predicated region fallthrough
CT: control target
= control target key end

     0   :  { %7 = vsyncpa [#allocation3], 0  ;;  %s860_s0 = inlined_call_operand.hbm [shape: f32[1,2,16,32], index: 0, kind: input, shape index: {}]   ;;  %s861_s1 = inlined_call_operand.hbm [shape: f32[1,2,16,32], index: 1, kind: input, shape index: {}]   ;;  %s862_s2 = inlined_call_operand.hbm [shape: f32[1,8,128], index: 2, kind: output, shape index: {}]  }
   0x1   :  { %8 = vsyncpa [#allocation6], 0 }
   0x2   :  { %9 = vsyncpa [#allocation4], 0  ;;  %s541_s9 = smov [#allocation2]   ;;  %s469_s13 = scalar_lea.hbm %s860_s0, 512 }
   0x3   :  { %s15_s10 = sshll.u32 %s541_s9, 4  ;;  %p470_p0 = scmp.ne.s32.totalorder %s860_s0, %s469_s13  ;;  %s16_s10 = int_to_ptr.vmem [resolvable:$true] %s15_s10 }
   0x4   :  { %p473_p1 = scmp.lt.u32.totalorder %s469_s13, %s860_s0 }
   0x6   :  { %p475_p2 = pnand %p473_p1, %p470_p0 }
   0x8   :  { %478 = shalt.err (!%p475_p2)
}
   0x9   :  { %s479_s18 = scalar_lea.vmem %s16_s10, 512  ;;  %p484_p4 = scmp.lt.s32.totalorder %s16_s10, %s16_s10 }
   0xa   :  { %p480_p3 = scmp.ne.s32.totalorder %s16_s10, %s479_s18  ;;  %p485_p5 = scmp.lt.s32.totalorder %s479_s18, %s479_s18 }
   0xc   :  { %p486_p6 = por %p485_p5, %p484_p4 }
   0xe   :  { %p487_p7 = pnand %p486_p6, %p480_p3 }
  0x10   :  { %490 = shalt.err (!%p487_p7)
}
  0x11   :  { %s542_s19 = smov 128   ;;  %s543_s20 = smov 8  }
  0x12   :  { %21 = dma.hbm_to_vmem [thread:$0]  %s860_s0, 512, %s16_s10, [#allocation3], %s542_s19, %s542_s19, %s543_s20  }
  0x13   :  { %s544_s23 = smov [#allocation5]   ;;  %s491_s27 = scalar_lea.hbm %s861_s1, 512 }
  0x14   :  { %s27_s24 = sshll.u32 %s544_s23, 4  ;;  %p492_p8 = scmp.ne.s32.totalorder %s861_s1, %s491_s27  ;;  %s28_s24 = int_to_ptr.vmem [resolvable:$true] %s27_s24 }
  0x15   :  { %p495_p9 = scmp.lt.u32.totalorder %s491_s27, %s861_s1 }
  0x17   :  { %p497_p10 = pnand %p495_p9, %p492_p8 }
  0x19   :  { %500 = shalt.err (!%p497_p10)
}
  0x1a   :  { %s501_s4 = scalar_lea.vmem %s28_s24, 512  ;;  %p506_p12 = scmp.lt.s32.totalorder %s28_s24, %s28_s24 }
  0x1b   :  { %p502_p11 = scmp.ne.s32.totalorder %s28_s24, %s501_s4  ;;  %p507_p13 = scmp.lt.s32.totalorder %s501_s4, %s501_s4 }
  0x1d   :  { %p508_p0 = por %p507_p13, %p506_p12 }
  0x1f   :  { %p509_p1 = pnand %p508_p0, %p502_p11 }
  0x21   :  { %512 = shalt.err (!%p509_p1)
}
  0x22   :  { %33 = dma.hbm_to_vmem [thread:$0]  %s861_s1, 512, %s28_s24, [#allocation6], %s542_s19, %s542_s19, %s543_s20  }
  0x23   :  { %535 = dma.done.wait [#allocation3], 512  }
  0x24   :  { %536 = vsyncadd [#allocation3], 4294966784 }
  0x25   :  { %537 = dma.done.wait [#allocation6], 512  }
  0x26   :  { %538 = vsyncadd [#allocation6], 4294966784  ;;  %v590_v0 = vld [vmem:[#allocation2] sm:$0xff]  ;;  %v592_v1 = vld [vmem:[#allocation2 + $0x10] sm:$0xff]  ;;  %s545_s6 = smov 32   ;;  %vm113_vm0 = vcmask 1047808   ;;  %v48_v43 = vlaneseq }
  0x27   :  { %114 = vrot.lane.b32.xlu0 %v590_v0, %s545_s6  ;;  %280 = vrot.lane.b32.xlu1 %v592_v1, %s545_s6  ;;  %v598_v2 = vld [vmem:[#allocation2 + $0x8] sm:$0xff]  ;;  %v600_v3 = vld [vmem:[#allocation2 + $0x18] sm:$0xff]  ;;  %s546_s1 = smov 1   ;;  %s547_s7 = smov 98   ;;  %vm428_vm7 = vcmask 261120  }
  0x28   :  { %s548_s8 = smov 97   ;;  %s549_s9 = smov 127   ;;  %v52_v45 = vand.u32 127, %v48_v43 }
  0x29   :  { %s550_s10 = smov [#allocation7]  }
  0x2a   :  { %v57_v47 = vand.u32 15, %v52_v45  ;;  %s449_s11 = sshll.u32 %s550_s10, 4  ;;  %s450_s11 = int_to_ptr.vmem [resolvable:$true] %s449_s11 }
  0x2b   :  { %117 = vrot.lane.b32.xlu0 %v598_v2, %s545_s6  ;;  %283 = vrot.lane.b32.xlu1 %v600_v3, %s545_s6  ;;  %s513_s12 = scalar_lea.vmem %s450_s11, 128  ;;  %p518_p3 = scmp.lt.s32.totalorder %s450_s11, %s450_s11 }
  0x2c   :  { %vm651_vm1 = vcmp.eq.s32.totalorder %v57_v47, 0  ;;  %vm655_vm2 = vcmp.eq.s32.totalorder %v57_v47, 15  ;;  %v72_v47 = vrot.slane %v598_v2, 1  ;;  %p514_p2 = scmp.ne.s32.totalorder %s450_s11, %s513_s12  ;;  %p519_p4 = scmp.lt.s32.totalorder %s513_s12, %s513_s12 }
  0x2e   :  { %p520_p5 = por %p519_p4, %p518_p3 }
  0x30   :  { %p521_p6 = pnand %p520_p5, %p514_p2 }
  0x99   :  { %v115_v4 = vpop.permute.xlu0 %114  ;;  %v281_v5 = vpop.permute.xlu1 %280 }
  0x9a   :  { %v116_v6 = vsel %vm113_vm0, %v115_v4, %v590_v0  ;;  %v282_v7 = vsel %vm113_vm0, %v281_v5, %v592_v1 }
  0x9b   :  { %120 = vrot.lane.b32.xlu0 %v116_v6, %s545_s6 }
  0x9d   :  { %v118_v8 = vpop.permute.xlu0 %117  ;;  %v284_v9 = vpop.permute.xlu1 %283 }
  0x9e   :  { %v119_v10 = vsel %vm113_vm0, %v118_v8, %v598_v2  ;;  %v285_v11 = vsel %vm113_vm0, %v284_v9, %v600_v3 }
  0x9f   :  { %286 = vrot.lane.b32.xlu0 %v282_v7, %s545_s6  ;;  %122 = vrot.lane.b32.xlu1 %v119_v10, %s545_s6 }
  0xa3   :  { %128 = vrot.lane.b32.xlu0 %v590_v0, %s546_s1  ;;  %288 = vrot.lane.b32.xlu1 %v285_v11, %s545_s6 }
  0xa7   :  { %130 = vrot.lane.b32.xlu1 %v598_v2, %s546_s1 }
 0x10d   :  { %v121_v12 = vpop.permute.xlu0 %120 }
 0x10e   :  { %v124_v13 = vsel %vm113_vm0, %v121_v12, %v590_v0 }
 0x10f   :  { %138 = vrot.lane.b32.xlu0 %v124_v13, %s547_s7 }
 0x111   :  { %v123_v14 = vpop.permute.xlu1 %122  ;;  %v287_v15 = vpop.permute.xlu0 %286 }
 0x112   :  { %v125_v16 = vsel %vm113_vm0, %v123_v14, %v598_v2  ;;  %v290_v17 = vsel %vm113_vm0, %v287_v15, %v592_v1 }
 0x113   :  { %140 = vrot.lane.b32.xlu1 %v125_v16, %s547_s7  ;;  %304 = vrot.lane.b32.xlu0 %v290_v17, %s547_s7 }
 0x115   :  { %v289_v18 = vpop.permute.xlu1 %288  ;;  %v129_v20 = vpop.permute.xlu0 %128 }
 0x116   :  { %v291_v19 = vsel %vm113_vm0, %v289_v18, %v600_v3  ;;  %v134_v21 = vsub.f32 %v124_v13, %v129_v20 }
 0x117   :  { %306 = vrot.lane.b32.xlu1 %v291_v19, %s547_s7  ;;  %294 = vrot.lane.b32.xlu0 %v592_v1, %s546_s1 }
 0x119   :  { %v131_v22 = vpop.permute.xlu1 %130 }
 0x11a   :  { %v135_v23 = vsub.f32 %v125_v16, %v131_v22 }
 0x11b   :  { %296 = vrot.lane.b32.xlu1 %v600_v3, %s546_s1  ;;  %166 = vrot.lane.b32.xlu0 %v124_v13, %s548_s8 }
 0x11f   :  { %168 = vrot.lane.b32.xlu1 %v125_v16, %s548_s8  ;;  %332 = vrot.lane.b32.xlu0 %v290_v17, %s548_s8 }
 0x123   :  { %334 = vrot.lane.b32.xlu1 %v291_v19, %s548_s8  ;;  %150 = vrot.lane.b32.xlu0 %v134_v21, %s549_s9 }
 0x127   :  { %152 = vrot.lane.b32.xlu1 %v135_v23, %s549_s9 }
 0x181   :  { %v139_v24 = vpop.permute.xlu0 %138 }
 0x182   :  { %v144_v29 = vsub.f32 %v124_v13, %v139_v24 }
 0x184   :  { %v146_v32 = vmul.f32 0.5, %v144_v29 }
 0x185   :  { %v141_v25 = vpop.permute.xlu1 %140  ;;  %v305_v26 = vpop.permute.xlu0 %304 }
 0x186   :  { %v145_v33 = vsub.f32 %v125_v16, %v141_v25  ;;  %v310_v34 = vsub.f32 %v290_v17, %v305_v26 }
 0x188   :  { %v147_v36 = vmul.f32 0.5, %v145_v33  ;;  %v312_v37 = vmul.f32 0.5, %v310_v34 }
 0x189   :  { %v307_v27 = vpop.permute.xlu1 %306  ;;  %v295_v28 = vpop.permute.xlu0 %294 }
 0x18a   :  { %v300_v30 = vsub.f32 %v290_v17, %v295_v28  ;;  %v311_v38 = vsub.f32 %v291_v19, %v307_v27 }
 0x18c   :  { %316 = vrot.lane.b32.xlu0 %v300_v30, %s549_s9  ;;  %v313_v39 = vmul.f32 0.5, %v311_v38 }
 0x18d   :  { %v297_v31 = vpop.permute.xlu1 %296  ;;  %v167_v40 = vpop.permute.xlu0 %166 }
 0x18e   :  { %v301_v35 = vsub.f32 %v291_v19, %v297_v31  ;;  %v172_v52 = vsub.f32 %v590_v0, %v167_v40 }
 0x190   :  { %318 = vrot.lane.b32.xlu1 %v301_v35, %s549_s9  ;;  %158 = vrot.lane.b32.xlu0 %v146_v32, %s549_s9 }
 0x191   :  { %v169_v41 = vpop.permute.xlu1 %168  ;;  %v333_v42 = vpop.permute.xlu0 %332 }
 0x192   :  { %v173_v57 = vsub.f32 %v598_v2, %v169_v41  ;;  %v338_v58 = vsub.f32 %v592_v1, %v333_v42 }
 0x194   :  { %160 = vrot.lane.b32.xlu1 %v147_v36, %s549_s9  ;;  %324 = vrot.lane.b32.xlu0 %v312_v37, %s549_s9 }
 0x195   :  { %v335_v44 = vpop.permute.xlu1 %334  ;;  %v151_v46 = vpop.permute.xlu0 %150 }
 0x196   :  { %v339_v5 = vsub.f32 %v600_v3, %v335_v44 }
 0x198   :  { %326 = vrot.lane.b32.xlu1 %v313_v39, %s549_s9 }
 0x199   :  { %v153_v48 = vpop.permute.xlu1 %152 }
 0x1fe   :  { %v317_v49 = vpop.permute.xlu0 %316 }
 0x202   :  { %v319_v53 = vpop.permute.xlu1 %318  ;;  %v159_v54 = vpop.permute.xlu0 %158 }
 0x203   :  { %v164_v55 = vsel %vm651_vm1, %v151_v46, %v159_v54  ;;  %v740_v46 = vshrl.u32 %v48_v43, 7  ;;  %v241_v54 = vrot.slane %v600_v3, 1  ;;  %v245_v43 = vrot.slane %v600_v3, 7 }
 0x204   :  { %v664_v56 = vsel %vm655_vm2, %v172_v52, %v164_v55  ;;  %v76_v52 = vrot.slane %v590_v0, 7  ;;  %v244_v55 = vrot.slane %v592_v1, 7 }
 0x205   :  { %176 = vrot.lane.b32.xlu0 %v664_v56, %s545_s6  ;;  %vm73_vm3 = vcmp.lt.s32.totalorder %v740_v46, 7  ;;  %vm78_vm4 = vcmp.lt.s32.totalorder %v740_v46, 1  ;;  %vm65_vm5 = vcmp.eq.s32.totalorder %v740_v46, 0 }
 0x206   :  { %v161_v59 = vpop.permute.xlu1 %160  ;;  %v325_v60 = vpop.permute.xlu0 %324 }
 0x207   :  { %v165_v61 = vsel %vm651_vm1, %v153_v48, %v161_v59  ;;  %v330_v62 = vsel %vm651_vm1, %v317_v49, %v325_v60  ;;  %v77_v48 = vrot.slane %v598_v2, 7  ;;  %v71_v49 = vrot.slane %v590_v0, 1 }
 0x208   :  { %v676_v63 = vsel %vm655_vm2, %v173_v57, %v165_v61  ;;  %v680_v4 = vsel %vm655_vm2, %v338_v58, %v330_v62 }
 0x209   :  { %179 = vrot.lane.b32.xlu1 %v676_v63, %s545_s6  ;;  %342 = vrot.lane.b32.xlu0 %v680_v4, %s545_s6  ;;  %v74_v57 = vsel %vm73_vm3, %v71_v49, %v72_v47  ;;  %v75_v58 = vsel %vm73_vm3, %v72_v47, %v71_v49  ;;  %v79_v59 = vsel %vm78_vm4, %v76_v52, %v77_v48 }
 0x20a   :  { %v327_v6 = vpop.permute.xlu1 %326  ;;  %v80_v60 = vsel %vm78_vm4, %v77_v48, %v76_v52 }
 0x20b   :  { %v331_v7 = vsel %vm651_vm1, %v319_v53, %v327_v6  ;;  %v240_v53 = vrot.slane %v592_v1, 1  ;;  %v247_v6 = vsel %vm78_vm4, %v245_v43, %v244_v55 }
 0x20c   :  { %v691_v8 = vsel %vm655_vm2, %v339_v5, %v331_v7  ;;  %v246_v5 = vsel %vm78_vm4, %v244_v55, %v245_v43  ;;  %v83_v7 = vsub.f32 %v74_v57, %v80_v60 }
 0x20d   :  { %345 = vrot.lane.b32.xlu1 %v691_v8, %s545_s6  ;;  %v242_v61 = vsel %vm73_vm3, %v240_v53, %v241_v54  ;;  %v243_v62 = vsel %vm73_vm3, %v241_v54, %v240_v53 }
 0x277   :  { %v177_v9 = vpop.permute.xlu0 %176 }
 0x278   :  { %v178_v10 = vsel %vm113_vm0, %v177_v9, %v664_v56  ;;  %v84_v9 = vsub.f32 %v75_v58, %v79_v59 }
 0x279   :  { %182 = vrot.lane.b32.xlu0 %v178_v10, %s545_s6  ;;  %v769_v10 = vadd.s32 8, %v740_v46 }
 0x27b   :  { %v180_v11 = vpop.permute.xlu1 %179  ;;  %v343_v12 = vpop.permute.xlu0 %342  ;;  %vm68_vm6 = vcmp.eq.s32.totalorder %v769_v10, 15 }
 0x27c   :  { %v181_v13 = vsel %vm113_vm0, %v180_v11, %v676_v63  ;;  %v344_v14 = vsel %vm113_vm0, %v343_v12, %v680_v4  ;;  %v250_v11 = vsub.f32 %v242_v61, %v247_v6  ;;  %v251_v12 = vsub.f32 %v243_v62, %v246_v5 }
 0x27d   :  { %184 = vrot.lane.b32.xlu1 %v181_v13, %s545_s6  ;;  %348 = vrot.lane.b32.xlu0 %v344_v14, %s545_s6  ;;  %v81_v14 = vsub.f32 %v74_v57, %v590_v0 }
 0x27f   :  { %v346_v15 = vpop.permute.xlu1 %345 }
 0x280   :  { %v347_v16 = vsel %vm113_vm0, %v346_v15, %v691_v8  ;;  %v85_v15 = vmul.f32 0.5, %v83_v7 }
 0x281   :  { %350 = vrot.lane.b32.xlu1 %v347_v16, %s545_s6  ;;  %190 = vrot.lane.b32.xlu0 %v664_v56, %s546_s1  ;;  %v86_v16 = vmul.f32 0.5, %v84_v9 }
 0x285   :  { %192 = vrot.lane.b32.xlu1 %v676_v63, %s546_s1 }
 0x2eb   :  { %v183_v17 = vpop.permute.xlu0 %182 }
 0x2ec   :  { %v186_v18 = vsel %vm113_vm0, %v183_v17, %v664_v56  ;;  %v90_v17 = vsub.f32 %v598_v2, %v79_v59 }
 0x2ed   :  { %200 = vrot.lane.b32.xlu0 %v186_v18, %s547_s7 }
 0x2ee   :  { %v785_v0 = vsel %vm68_vm6, %v90_v17, %v86_v16 }
 0x2ef   :  { %v185_v19 = vpop.permute.xlu1 %184  ;;  %v349_v20 = vpop.permute.xlu0 %348 }
 0x2f0   :  { %v187_v21 = vsel %vm113_vm0, %v185_v19, %v676_v63  ;;  %v352_v22 = vsel %vm113_vm0, %v349_v20, %v680_v4  ;;  %v252_v19 = vmul.f32 0.5, %v250_v11  ;;  %v253_v20 = vmul.f32 0.5, %v251_v12 }
 0x2f1   :  { %202 = vrot.lane.b32.xlu1 %v187_v21, %s547_s7  ;;  %366 = vrot.lane.b32.xlu0 %v352_v22, %s547_s7 }
 0x2f3   :  { %v351_v23 = vpop.permute.xlu1 %350  ;;  %v191_v25 = vpop.permute.xlu0 %190 }
 0x2f4   :  { %v353_v24 = vsel %vm113_vm0, %v351_v23, %v691_v8  ;;  %v196_v26 = vsub.f32 %v186_v18, %v191_v25  ;;  %v87_v23 = vsel %vm65_vm5, %v81_v14, %v85_v15 }
 0x2f5   :  { %368 = vrot.lane.b32.xlu1 %v353_v24, %s547_s7  ;;  %356 = vrot.lane.b32.xlu0 %v680_v4, %s546_s1  ;;  %v93_v25 = vrot.slane %v87_v23, 1 }
 0x2f7   :  { %v193_v27 = vpop.permute.xlu1 %192 }
 0x2f8   :  { %v197_v28 = vsub.f32 %v187_v21, %v193_v27  ;;  %v98_v27 = vrot.slane %v785_v0, 7 }
 0x2f9   :  { %358 = vrot.lane.b32.xlu1 %v691_v8, %s546_s1  ;;  %228 = vrot.lane.b32.xlu0 %v186_v18, %s548_s8 }
 0x2fd   :  { %230 = vrot.lane.b32.xlu1 %v187_v21, %s548_s8  ;;  %394 = vrot.lane.b32.xlu0 %v352_v22, %s548_s8 }
 0x301   :  { %396 = vrot.lane.b32.xlu1 %v353_v24, %s548_s8  ;;  %212 = vrot.lane.b32.xlu0 %v196_v26, %s549_s9  ;;  %v97_v26 = vrot.slane %v87_v23, 7 }
 0x303   :  { %v99_v52 = vsel %vm78_vm4, %v97_v26, %v98_v27 }
 0x304   :  { %v110_v17 = vsub.f32 %v785_v0, %v99_v52 }
 0x305   :  { %214 = vrot.lane.b32.xlu1 %v197_v28, %s549_s9 }
 0x35f   :  { %v201_v29 = vpop.permute.xlu0 %200 }
 0x360   :  { %v206_v34 = vsub.f32 %v186_v18, %v201_v29  ;;  %v248_v18 = vsub.f32 %v242_v61, %v592_v1 }
 0x362   :  { %v208_v37 = vmul.f32 0.5, %v206_v34  ;;  %v100_v34 = vsel %vm78_vm4, %v98_v27, %v97_v26 }
 0x363   :  { %v203_v30 = vpop.permute.xlu1 %202  ;;  %v367_v31 = vpop.permute.xlu0 %366 }
 0x364   :  { %v207_v38 = vsub.f32 %v187_v21, %v203_v30  ;;  %v372_v39 = vsub.f32 %v352_v22, %v367_v31  ;;  %v257_v21 = vsub.f32 %v600_v3, %v246_v5  ;;  %v94_v3 = vrot.slane %v785_v0, 1 }
 0x366   :  { %v209_v41 = vmul.f32 0.5, %v207_v38  ;;  %v374_v42 = vmul.f32 0.5, %v372_v39  ;;  %v791_v1 = vsel %vm68_vm6, %v257_v21, %v253_v20  ;;  %v96_v49 = vsel %vm73_vm3, %v94_v3, %v93_v25 }
 0x367   :  { %v369_v32 = vpop.permute.xlu1 %368  ;;  %v357_v33 = vpop.permute.xlu0 %356  ;;  %v261_v29 = vrot.slane %v791_v1, 1  ;;  %v265_v31 = vrot.slane %v791_v1, 7  ;;  %v104_v60 = vsub.f32 %v96_v49, %v99_v52 }
 0x368   :  { %v362_v35 = vsub.f32 %v352_v22, %v357_v33  ;;  %v373_v44 = vsub.f32 %v353_v24, %v369_v32  ;;  %v95_v33 = vsel %vm73_vm3, %v93_v25, %v94_v3 }
 0x369   :  { %v101_v43 = vsub.f32 %v95_v33, %v87_v23  ;;  %v106_v16 = vmul.f32 0.5, %v104_v60 }
 0x36a   :  { %378 = vrot.lane.b32.xlu0 %v362_v35, %s549_s9  ;;  %v375_v45 = vmul.f32 0.5, %v373_v44  ;;  %v45_v44 = vld [vmem:[#allocation5 + $0x8] sm:$0xff] }
 0x36b   :  { %v359_v36 = vpop.permute.xlu1 %358  ;;  %v771_v13 = vpop.permute.xlu0 %228  ;;  %v409_v58 = vmul.f32 %v45_v44, %v45_v44 }
 0x36c   :  { %v363_v40 = vsub.f32 %v353_v24, %v359_v36  ;;  %v254_v24 = vsel %vm65_vm5, %v248_v18, %v252_v19  ;;  %v44_v36 = vld [vmem:[#allocation5] sm:$0xff]  ;;  %v234_v12 = vsub.f32 %v664_v56, %v771_v13 }
 0x36d   :  { %v260_v28 = vrot.slane %v254_v24, 1  ;;  %v264_v30 = vrot.slane %v254_v24, 7 }
 0x36e   :  { %380 = vrot.lane.b32.xlu1 %v363_v40, %s549_s9  ;;  %220 = vrot.lane.b32.xlu0 %v208_v37, %s549_s9  ;;  %v46_v37 = vld [vmem:[#allocation5 + $0x10] sm:$0xff]  ;;  %v103_v40 = vsub.f32 %v95_v33, %v100_v34 }
 0x36f   :  { %v779_v22 = vpop.permute.xlu1 %230  ;;  %v395_v2 = vpop.permute.xlu0 %394  ;;  %v262_v38 = vsel %vm73_vm3, %v260_v28, %v261_v29  ;;  %v267_v39 = vsel %vm78_vm4, %v265_v31, %v264_v30  ;;  %v263_v54 = vsel %vm73_vm3, %v261_v29, %v260_v28  ;;  %v266_v55 = vsel %vm78_vm4, %v264_v30, %v265_v31 }
 0x370   :  { %v270_v53 = vsub.f32 %v262_v38, %v267_v39  ;;  %v105_v57 = vmul.f32 0.5, %v103_v40  ;;  %v268_v6 = vsub.f32 %v262_v38, %v254_v24  ;;  %v271_v9 = vsub.f32 %v263_v54, %v266_v55 }
 0x371   :  { %v277_v18 = vsub.f32 %v791_v1, %v266_v55  ;;  %v400_v20 = vsub.f32 %v680_v4, %v395_v2  ;;  %v235_v1 = vsub.f32 %v676_v63, %v779_v22  ;;  %v112_v29 = vsel %vm68_vm6, %v110_v17, %v106_v16 }
 0x372   :  { %222 = vrot.lane.b32.xlu1 %v209_v41, %s549_s9  ;;  %386 = vrot.lane.b32.xlu0 %v374_v42, %s549_s9  ;;  %v408_v41 = vmul.f32 %v44_v36, %v44_v36  ;;  %v410_v42 = vmul.f32 %v46_v37, %v46_v37  ;;  %v272_v7 = vmul.f32 0.5, %v270_v53  ;;  %v107_v14 = vsel %vm65_vm5, %v101_v43, %v105_v57 }
 0x373   :  { %v797_v32 = vpop.permute.xlu1 %396  ;;  %v213_v35 = vpop.permute.xlu0 %212  ;;  %v273_v13 = vmul.f32 0.5, %v271_v9 }
 0x374   :  { %v412_v61 = vadd.f32 %v410_v42, %v408_v41  ;;  %v274_v24 = vsel %vm65_vm5, %v268_v6, %v272_v7  ;;  %v401_v28 = vsub.f32 %v691_v8, %v797_v32 }
 0x375   :  { %v279_v63 = vsel %vm68_vm6, %v277_v18, %v273_v13 }
 0x376   :  { %388 = vrot.lane.b32.xlu1 %v375_v45, %s549_s9  ;;  %v47_v45 = vld [vmem:[#allocation5 + $0x18] sm:$0xff]  ;;  %v414_v19 = vsub.f32 1.0, %v412_v61 }
 0x377   :  { %v215_v47 = vpop.permute.xlu1 %214  ;;  %v411_v59 = vmul.f32 %v47_v45, %v47_v45 }
 0x378   :  { %v420_v2 = vmul.f32 %v414_v19, %v46_v37  ;;  %v416_v46 = vmul.f32 %v414_v19, %v44_v36 }
 0x379   :  { %v413_v15 = vadd.f32 %v411_v59, %v409_v58 }
 0x37b   :  { %v415_v3 = vsub.f32 1.0, %v413_v15 }
 0x37d   :  { %v417_v36 = vmul.f32 %v415_v3, %v45_v44  ;;  %v421_v38 = vmul.f32 %v415_v3, %v47_v45 }
 0x37f   :  { %v425_v42 = vmul.f32 %v421_v38, %v421_v38 }
 0x3dc   :  { %v379_v48 = vpop.permute.xlu0 %378 }
 0x3e0   :  { %v381_v62 = vpop.permute.xlu1 %380  ;;  %v221_v5 = vpop.permute.xlu0 %220 }
 0x3e1   :  { %v226_v11 = vsel %vm651_vm1, %v213_v35, %v221_v5  ;;  %v424_v35 = vmul.f32 %v420_v2, %v420_v2 }
 0x3e2   :  { %v236_v21 = vsel %vm655_vm2, %v234_v12, %v226_v11 }
 0x3e3   :  { %v238_v26 = vadd.f32 %v236_v21, %v107_v14 }
 0x3e4   :  { %v223_v23 = vpop.permute.xlu1 %222  ;;  %v387_v56 = vpop.permute.xlu0 %386 }
 0x3e5   :  { %v227_v25 = vsel %vm651_vm1, %v215_v47, %v223_v23  ;;  %v392_v0 = vsel %vm651_vm1, %v379_v48, %v387_v56 }
 0x3e6   :  { %v402_v4 = vsel %vm655_vm2, %v400_v20, %v392_v0  ;;  %v237_v30 = vsel %vm655_vm2, %v235_v1, %v227_v25 }
 0x3e7   :  { %v404_v27 = vadd.f32 %v402_v4, %v274_v24  ;;  %v239_v8 = vadd.f32 %v237_v30, %v112_v29 }
 0x3e8   :  { %v389_v22 = vpop.permute.xlu1 %388 }
 0x3e9   :  { %v393_v31 = vsel %vm651_vm1, %v381_v62, %v389_v22  ;;  %v406_v33 = vadd.f32 %v404_v27, %v238_v26 }
 0x3ea   :  { %v403_v34 = vsel %vm655_vm2, %v401_v28, %v393_v31 }
 0x3eb   :  { %v405_v32 = vadd.f32 %v403_v34, %v279_v63  ;;  %v418_v37 = vadd.f32 %v416_v46, %v406_v33 }
 0x3ed   :  { %v422_v39 = vmul.f32 %v418_v37, %v418_v37  ;;  %v407_v40 = vadd.f32 %v405_v32, %v239_v8 }
 0x3ef   :  { %v426_v41 = vadd.f32 %v424_v35, %v422_v39  ;;  %v419_v10 = vadd.f32 %v417_v36, %v407_v40 }
 0x3f1   :  { %v429_v47 = vsel %vm428_vm7, %v426_v41, 0.0  ;;  %v423_v48 = vmul.f32 %v419_v10, %v419_v10 }
 0x3f2   :  { %430 = vadd.xlane.f32.xlu0 %v429_v47 }
 0x3f3   :  { %v427_v50 = vadd.f32 %v425_v42, %v423_v48 }
 0x3f5   :  { %v432_v49 = vsel %vm428_vm7, %v427_v50, 0.0 }
 0x3f6   :  { %433 = vadd.xlane.f32.xlu1 %v432_v49 }
 0x47f   :  { %v431_v51 = vpop.xlane.xlu0 %430 }
 0x483   :  { %v434_v52 = vpop.xlane.xlu1 %433 }
 0x484   :  { %v435_v53 = vadd.f32 %v434_v52, %v431_v51 }
 0x486   :  { %v436_v44 = vrot.slane %v435_v53, 4 }
 0x488   :  { %v437_v54 = vadd.f32 %v436_v44, %v435_v53 }
 0x48a   :  { %v438_v55 = vrot.slane %v437_v54, 2 }
 0x48c   :  { %v439_v43 = vadd.f32 %v438_v55, %v437_v54 }
 0x48e   :  { %v440_v45 = vrot.slane %v439_v43, 1 }
 0x490   :  { %v441_v57 = vadd.f32 %v440_v45, %v439_v43 }
 0x492   :  { %442 = vst [vmem:[#allocation7] sm:$0xff] %v441_v57 }
 0x493   :  { %524 = shalt.err (!%p521_p6)
}
 0x494   :  { %s525_s15 = scalar_lea.hbm %s862_s2, 128 }
 0x495   :  { %p526_p7 = scmp.ne.s32.totalorder %s862_s2, %s525_s15  ;;  %p529_p8 = scmp.lt.u32.totalorder %s525_s15, %s862_s2 }
 0x497   :  { %p531_p9 = pnand %p529_p8, %p526_p7 }
 0x499   :  { %534 = shalt.err (!%p531_p9)
}
 0x49a   :  { %452 = dma.vmem_to_hbm [thread:$0]  %s450_s11, 128, %s862_s2, [#allocation4]  }
 0x49b   :  { %539 = dma.done.wait [#allocation4], 128  }
 0x49c   :  { %540 = vsyncadd [#allocation4], 4294967168 }
 0x49d   :  { %456 = vsyncpa [#allocation3], 1 }
 0x49e   :  { %457 = vsyncpa [#allocation6], 1 }
 0x49f   :  { %458 = vsyncpa [#allocation4], 1 }

</bundles_post_ra>
